<compile_context>
chip_gen: v7x
topology: tpu7x:2x2x1
jax: 0.10.0
libtpu: 0.0.40
codegen_flags: <defaults>
</compile_context>

<pallas_src>
import functools
import warnings

import jax
import jax.numpy as jnp
import numpy as np
from jax.experimental import pallas as pl
from jax.experimental.pallas import tpu as pltpu

_LANES = 128

# Donation is best-effort; keep a possible "donated buffers were not usable"
# warning from polluting the run output.
warnings.filterwarnings("ignore", message="Some donated buffers were not usable")


def _round_up(a, b):
    return ((a + b - 1) // b) * b


def _field_params(num_ctrl):
    """inv_dx and (origin + dx) of the default support_range field, as f32."""
    dx = 2.0 / (num_ctrl - 3)
    origin = -1.0 - dx
    return np.float32(1.0 / dx), np.float32(origin + dx)


def _spline_terms(z, inv_dx, shift):
    """Knot index and the 4 cubic B-spline weights for every element of z."""
    tn = (z - shift) * inv_dx            # == (t - origin - dx) / dx
    idx_f = jnp.floor(tn)
    idx = idx_f.astype(jnp.int32)
    u = tn - idx_f
    u2 = u * u
    u3 = u2 * u
    omu = 1.0 - u
    sixth = np.float32(1.0 / 6.0)
    w0 = omu * omu * omu * sixth
    w2 = (-3.0 * u3 + 3.0 * u2 + 3.0 * u + 1.0) * sixth
    w3 = u3 * sixth
    w1 = 1.0 - w0 - w2 - w3              # partition of unity (cheaper than poly)
    return idx, (w0, w1, w2, w3)


def _make_gather_kernel(num_ctrl, inv_dx, shift, support_outside):
    """Preferred path: XLU lane gather from a VMEM-resident phi row."""

    def kernel(phi_ref, z_ref, o_ref):
        # phi_ref: (1, 128) f32 VMEM (phi padded to 128 lanes)
        # z_ref / o_ref: (block_rows, 128) f32 VMEM (lane/sublane dense)
        z = z_ref[...]
        idx, w = _spline_terms(z, inv_dx, shift)
        phi_b = jnp.broadcast_to(phi_ref[...], z.shape)   # per-sublane lane table

        def tap(i):
            g = jnp.clip(idx + i, 0, num_ctrl - 1)        # matches torch.clamp
            return jnp.take_along_axis(phi_b, g, axis=-1,
                                       mode="promise_in_bounds")

        disp = w[0] * tap(0) + w[1] * tap(1) + w[2] * tap(2) + w[3] * tap(3)
        if not support_outside:
            invalid = (idx < 0) | (idx >= num_ctrl - 3)
            disp = jnp.where(invalid, np.float32(np.nan), disp)
        o_ref[...] = z + disp

    return kernel


def _make_select_kernel(num_ctrl, inv_dx, shift, support_outside):
    """Fallback path: one-hot select chain with SMEM phi (always lowers)."""

    def kernel(phi_ref, z_ref, o_ref):
        # phi_ref: (NC,) f32 SMEM; z_ref / o_ref: (block_rows, 128) f32 VMEM
        z = z_ref[...]
        idx, w = _spline_terms(z, inv_dx, shift)
        phi = [phi_ref[j] for j in range(num_ctrl)]       # hoisted SMEM reads
        disp = jnp.zeros_like(z)
        for i in range(4):
            sel = idx + i
            if support_outside:
                sel = jnp.clip(sel, 0, num_ctrl - 1)
            g = jnp.zeros_like(z)
            for j in range(num_ctrl):
                g = jnp.where(sel == j, phi[j], g)
            disp = disp + w[i] * g
        if not support_outside:
            invalid = (idx < 0) | (idx >= num_ctrl - 3)
            disp = jnp.where(invalid, np.float32(np.nan), disp)
        o_ref[...] = z + disp

    return kernel


_GATHER_SUPPORTED = None


def _gather_supported():
    """One-time probe: does a lane gather (take_along_axis) lower on this TPU?"""
    global _GATHER_SUPPORTED
    if _GATHER_SUPPORTED is None:
        def probe(p_ref, i_ref, o_ref):
            pb = jnp.broadcast_to(p_ref[...], i_ref.shape)
            o_ref[...] = jnp.take_along_axis(pb, i_ref[...], axis=-1,
                                             mode="promise_in_bounds")

        try:
            table = jnp.arange(_LANES, dtype=jnp.float32)[None, :]
            idx = jnp.broadcast_to(
                (_LANES - 1) - jnp.arange(_LANES, dtype=jnp.int32)[None, :],
                (8, _LANES))
            out = pl.pallas_call(
                probe,
                out_shape=jax.ShapeDtypeStruct((8, _LANES), jnp.float32),
            )(table, idx)
            expect = np.broadcast_to(
                np.arange(_LANES - 1, -1, -1, dtype=np.float32), (8, _LANES))
            _GATHER_SUPPORTED = bool(np.array_equal(np.asarray(out), expect))
        except Exception:
            _GATHER_SUPPORTED = False
    return _GATHER_SUPPORTED


@functools.partial(
    jax.jit,
    static_argnames=("support_outside", "max_block_rows", "use_gather"),
    donate_argnums=(0,))
def _bspline_forward(x, phi_x, *, support_outside, max_block_rows, use_gather):
    num_ctrl = int(phi_x.shape[0])
    assert num_ctrl > 3
    inv_dx, shift = _field_params(num_ctrl)

    # Only the z channel is touched; compute in f32 regardless of x.dtype.
    z = x[..., 2].astype(jnp.float32).reshape(-1)
    p = z.shape[0]

    # Lay z out as a lane/sublane-dense (rows, 128) slab.  Pad only when the
    # point count is not lane-aligned (the pad forces a copy); ragged rows are
    # handled by the grid, not by padding to a block multiple.
    rows = max(pl.cdiv(p, _LANES), 8)
    if rows * _LANES != p:
        z = jnp.pad(z, (0, rows * _LANES - p))
    z2 = z.reshape(rows, _LANES)

    # Block choice: multiple of 8 rows, capped, aiming for >=2 grid steps so the
    # "parallel" axis can shard across both TensorCores on v7x.
    max_block_rows = max(8, _round_up(int(max_block_rows), 8))
    block_rows = min(max_block_rows, _round_up(pl.cdiv(rows, 2), 8))
    grid = (pl.cdiv(rows, block_rows),)

    if use_gather and num_ctrl <= _LANES:
        kernel = _make_gather_kernel(num_ctrl, inv_dx, shift, support_outside)
        phi_arg = jnp.pad(phi_x.astype(jnp.float32),
                          (0, _LANES - num_ctrl)).reshape(1, _LANES)
        phi_spec = pl.BlockSpec((1, _LANES), lambda i: (0, 0))
    else:
        kernel = _make_select_kernel(num_ctrl, inv_dx, shift, support_outside)
        phi_arg = phi_x.astype(jnp.float32)
        phi_spec = pl.BlockSpec(memory_space=pltpu.MemorySpace.SMEM)

    new_z = pl.pallas_call(
        kernel,
        out_shape=jax.ShapeDtypeStruct((rows, _LANES), jnp.float32),
        grid=grid,
        in_specs=[phi_spec,
                  pl.BlockSpec((block_rows, _LANES), lambda i: (i, 0))],
        out_specs=pl.BlockSpec((block_rows, _LANES), lambda i: (i, 0)),
        compiler_params=pltpu.CompilerParams(
            dimension_semantics=("parallel",)),
    )(phi_arg, z2)

    new_z = new_z.reshape(-1)[:p].reshape(x.shape[:-1]).astype(x.dtype)
    # TODO(synk): the PyTorch forward mutates x in place; JAX is functional, so
    # we return a new array — donate_argnums lets XLA reuse x's buffer for it.
    return x.at[..., 2].set(new_z)


def bspline_deformation_field(x, phi_x, support_outside=False,
                              max_block_rows=1024):
    """Forward of BsplineDeformationField: x[..., 2] += bspline(x[..., 2]).

    Note: x is donated (its buffer is reused) — do not reuse x after the call.
    Call sites that already hold z contiguously (SoA) can feed the pallas_call
    directly with the flat z to skip the strided channel extract.
    """
    return _bspline_forward(x, phi_x,
                            support_outside=bool(support_outside),
                            max_block_rows=int(max_block_rows),
                            use_gather=_gather_supported())


def _reference(x, phi_x, support_outside=False):
    """Pure-JAX reference mirroring the PyTorch module."""
    num_ctrl = int(phi_x.shape[0])
    inv_dx, shift = _field_params(num_ctrl)
    phi = phi_x.astype(jnp.float32)
    z = x[..., 2].astype(jnp.float32).reshape(-1)
    tn = (z - shift) * inv_dx
    idx_f = jnp.floor(tn)
    indices = idx_f.astype(jnp.int32)
    u = tn - idx_f
    u2, u3 = u * u, u * u * u
    w = [(1.0 - u) ** 3 / 6.0,
         (3.0 * u3 - 6.0 * u2 + 4.0) / 6.0,
         (-3.0 * u3 + 3.0 * u2 + 3.0 * u + 1.0) / 6.0,
         u3 / 6.0]
    disp = jnp.zeros_like(z)
    for i in range(4):
        inds = indices + i
        if support_outside:
            inds = jnp.clip(inds, 0, num_ctrl - 1)
        disp = disp + w[i] * phi[jnp.clip(inds, 0, num_ctrl - 1)]
    if not support_outside:
        invalid = (indices < 0) | (indices >= num_ctrl - 3)
        disp = jnp.where(invalid, jnp.nan, disp)
    return x.at[..., 2].add(disp.reshape(x.shape[:-1]).astype(x.dtype))


if __name__ == "__main__":
    key = jax.random.PRNGKey(0)
    k1, k2, k3 = jax.random.split(key, 3)

    num_control_points = 8
    phi_x = (0.1 * jax.random.normal(k1, (num_control_points,))).astype(jnp.float32)

    # Test 1: points strictly inside the default support [-1, 1), module default
    # support_outside=False -> finite outputs (single grid step).
    x1 = jax.random.uniform(k2, (2, 16, 16, 3), dtype=jnp.float32,
                            minval=-0.999, maxval=0.999)
    ref1 = _reference(x1, phi_x, support_outside=False)
    out1 = jax.block_until_ready(
        bspline_deformation_field(x1, phi_x, support_outside=False))
    np.testing.assert_allclose(np.asarray(out1), np.asarray(ref1),
                               rtol=1e-5, atol=1e-5)

    # Test 2: mixed in/out-of-support points with support_outside=True (clamped
    # lookup); large enough that the grid has >=2 steps (pipelining + megacore).
    x2 = jax.random.uniform(k3, (2, 64, 64, 3), dtype=jnp.float32,
                            minval=-1.5, maxval=1.5)
    ref2 = _reference(x2, phi_x, support_outside=True)
    out2 = jax.block_until_ready(
        bspline_deformation_field(x2, phi_x, support_outside=True))
    np.testing.assert_allclose(np.asarray(out2), np.asarray(ref2),
                               rtol=1e-5, atol=1e-5)

    print("KERNEL_OK")
</pallas_src>

<mosaic_0001>
module attributes {stable_mosaic.version = 11 : i64} {
  func.func @probe(%arg0: memref<1x128xf32, #tpu.memory_space<vmem>>, %arg1: memref<8x128xi32, #tpu.memory_space<vmem>>, %arg2: memref<8x128xf32, #tpu.memory_space<vmem>>) attributes {dimension_semantics = [], scalar_prefetch = 0 : i64, scratch_operands = 0 : i64, tpu.core_type = #tpu.core_type<tc>} {
    %c0 = arith.constant 0 : index
    %c0_0 = arith.constant 0 : index
    %0 = vector.load %arg0[%c0, %c0_0] : memref<1x128xf32, #tpu.memory_space<vmem>>, vector<1x128xf32>
    %1 = vector.shape_cast %0 : vector<1x128xf32> to vector<1x128xf32>
    %2 = vector.broadcast %1 : vector<1x128xf32> to vector<8x128xf32>
    %c0_1 = arith.constant 0 : index
    %c0_2 = arith.constant 0 : index
    %3 = vector.load %arg1[%c0_1, %c0_2] : memref<8x128xi32, #tpu.memory_space<vmem>>, vector<8x128xi32>
    %4 = vector.shape_cast %3 : vector<8x128xi32> to vector<8x128x1xi32>
    %5 = vector.shape_cast %4 : vector<8x128x1xi32> to vector<8x128xi32>
    %6 = tpu.dynamic_gather %2[%5] in [1] : vector<8x128xf32>, vector<8x128xi32> -> vector<8x128xf32>
    %c0_3 = arith.constant 0 : index
    %c0_4 = arith.constant 0 : index
    %7 = vector.load %arg2[%c0_3, %c0_4] : memref<8x128xf32, #tpu.memory_space<vmem>>, vector<8x128xf32>
    tpu.vector_store %arg2[%c0_3, %c0_4], %6 {strides = array<i32>} : memref<8x128xf32, #tpu.memory_space<vmem>>, vector<8x128xf32>,
    return
  }
}

module attributes {stable_mosaic.version = 11 : i64} {
  func.func @kernel(%arg0: i32, %arg1: memref<8xf32, #tpu.memory_space<smem>>, %arg2: memref<8x128xf32, #tpu.memory_space<vmem>>, %arg3: memref<8x128xf32, #tpu.memory_space<vmem>>) attributes {dimension_semantics = [#tpu.dimension_semantics<parallel>], iteration_bounds = array<i64: 1>, scalar_prefetch = 0 : i64, scratch_operands = 0 : i64, tpu.core_type = #tpu.core_type<tc>, window_params = [{transform_indices = @transform_0, window_bounds = array<i64: 8>}, {transform_indices = @transform_1, window_bounds = array<i64: 8, 128>}, {transform_indices = @transform_2, window_bounds = array<i64: 8, 128>}]} {
    %c0 = arith.constant 0 : index
    %c0_0 = arith.constant 0 : index
    %0 = vector.load %arg2[%c0, %c0_0] : memref<8x128xf32, #tpu.memory_space<vmem>>, vector<8x128xf32>
    %cst = arith.constant -1.000000e+00 : f32
    %1 = vector.broadcast %cst : f32 to vector<8x128xf32>
    %2 = arith.subf %0, %1 : vector<8x128xf32>
    %cst_1 = arith.constant 2.500000e+00 : f32
    %3 = vector.broadcast %cst_1 : f32 to vector<8x128xf32>
    %4 = arith.mulf %2, %3 : vector<8x128xf32>
    %5 = math.floor %4 : vector<8x128xf32>
    %6 = arith.fptosi %5 : vector<8x128xf32> to vector<8x128xi32>
    %7 = arith.subf %4, %5 : vector<8x128xf32>
    %8 = arith.mulf %7, %7 : vector<8x128xf32>
    %9 = arith.mulf %8, %7 : vector<8x128xf32>
    %cst_2 = arith.constant 1.000000e+00 : f32
    %10 = vector.broadcast %cst_2 : f32 to vector<8x128xf32>
    %11 = arith.subf %10, %7 : vector<8x128xf32>
    %12 = arith.mulf %11, %11 : vector<8x128xf32>
    %13 = arith.mulf %12, %11 : vector<8x128xf32>
    %cst_3 = arith.constant 0.166666672 : f32
    %14 = vector.broadcast %cst_3 : f32 to vector<8x128xf32>
    %15 = arith.mulf %13, %14 : vector<8x128xf32>
    %cst_4 = arith.constant -3.000000e+00 : f32
    %16 = vector.broadcast %cst_4 : f32 to vector<8x128xf32>
    %17 = arith.mulf %16, %9 : vector<8x128xf32>
    %cst_5 = arith.constant 3.000000e+00 : f32
    %18 = vector.broadcast %cst_5 : f32 to vector<8x128xf32>
    %19 = arith.mulf %18, %8 : vector<8x128xf32>
    %20 = arith.addf %17, %19 : vector<8x128xf32>
    %cst_6 = arith.constant 3.000000e+00 : f32
    %21 = vector.broadcast %cst_6 : f32 to vector<8x128xf32>
    %22 = arith.mulf %21, %7 : vector<8x128xf32>
    %23 = arith.addf %20, %22 : vector<8x128xf32>
    %cst_7 = arith.constant 1.000000e+00 : f32
    %24 = vector.broadcast %cst_7 : f32 to vector<8x128xf32>
    %25 = arith.addf %23, %24 : vector<8x128xf32>
    %cst_8 = arith.constant 0.166666672 : f32
    %26 = vector.broadcast %cst_8 : f32 to vector<8x128xf32>
    %27 = arith.mulf %25, %26 : vector<8x128xf32>
    %cst_9 = arith.constant 0.166666672 : f32
    %28 = vector.broadcast %cst_9 : f32 to vector<8x128xf32>
    %29 = arith.mulf %9, %28 : vector<8x128xf32>
    %cst_10 = arith.constant 1.000000e+00 : f32
    %30 = vector.broadcast %cst_10 : f32 to vector<8x128xf32>
    %31 = arith.subf %30, %15 : vector<8x128xf32>
    %32 = arith.subf %31, %27 : vector<8x128xf32>
    %33 = arith.subf %32, %29 : vector<8x128xf32>
    %c0_11 = arith.constant 0 : index
    %34 = memref.load %arg1[%c0_11] : memref<8xf32, #tpu.memory_space<smem>>
    %c1 = arith.constant 1 : index
    %35 = memref.load %arg1[%c1] : memref<8xf32, #tpu.memory_space<smem>>
    %c2 = arith.constant 2 : index
    %36 = memref.load %arg1[%c2] : memref<8xf32, #tpu.memory_space<smem>>
    %c3 = arith.constant 3 : index
    %37 = memref.load %arg1[%c3] : memref<8xf32, #tpu.memory_space<smem>>
    %c4 = arith.constant 4 : index
    %38 = memref.load %arg1[%c4] : memref<8xf32, #tpu.memory_space<smem>>
    %c5 = arith.constant 5 : index
    %39 = memref.load %arg1[%c5] : memref<8xf32, #tpu.memory_space<smem>>
    %c6 = arith.constant 6 : index
    %40 = memref.load %arg1[%c6] : memref<8xf32, #tpu.memory_space<smem>>
    %c7 = arith.constant 7 : index
    %41 = memref.load %arg1[%c7] : memref<8xf32, #tpu.memory_space<smem>>
    %cst_12 = arith.constant 0.000000e+00 : f32
    %42 = vector.broadcast %cst_12 : f32 to vector<8x128xf32>
    %c0_i32 = arith.constant 0 : i32
    %43 = vector.broadcast %c0_i32 : i32 to vector<8x128xi32>
    %44 = arith.addi %6, %43 : vector<8x128xi32>
    %cst_13 = arith.constant 0.000000e+00 : f32
    %45 = vector.broadcast %cst_13 : f32 to vector<8x128xf32>
    %c0_i32_14 = arith.constant 0 : i32
    %46 = vector.broadcast %c0_i32_14 : i32 to vector<8x128xi32>
    %47 = arith.cmpi eq, %44, %46 : vector<8x128xi32>
    %48 = vector.broadcast %34 : f32 to vector<8x128xf32>
    %49 = arith.select %47, %48, %45 : vector<8x128xi1>, vector<8x128xf32>
    %c1_i32 = arith.constant 1 : i32
    %50 = vector.broadcast %c1_i32 : i32 to vector<8x128xi32>
    %51 = arith.cmpi eq, %44, %50 : vector<8x128xi32>
    %52 = vector.broadcast %35 : f32 to vector<8x128xf32>
    %53 = arith.select %51, %52, %49 : vector<8x128xi1>, vector<8x128xf32>
    %c2_i32 = arith.constant 2 : i32
    %54 = vector.broadcast %c2_i32 : i32 to vector<8x128xi32>
    %55 = arith.cmpi eq, %44, %54 : vector<8x128xi32>
    %56 = vector.broadcast %36 : f32 to vector<8x128xf32>
    %57 = arith.select %55, %56, %53 : vector<8x128xi1>, vector<8x128xf32>
    %c3_i32 = arith.constant 3 : i32
    %58 = vector.broadcast %c3_i32 : i32 to vector<8x128xi32>
    %59 = arith.cmpi eq, %44, %58 : vector<8x128xi32>
    %60 = vector.broadcast %37 : f32 to vector<8x128xf32>
    %61 = arith.select %59, %60, %57 : vector<8x128xi1>, vector<8x128xf32>
    %c4_i32 = arith.constant 4 : i32
    %62 = vector.broadcast %c4_i32 : i32 to vector<8x128xi32>
    %63 = arith.cmpi eq, %44, %62 : vector<8x128xi32>
    %64 = vector.broadcast %38 : f32 to vector<8x128xf32>
    %65 = arith.select %63, %64, %61 : vector<8x128xi1>, vector<8x128xf32>
    %c5_i32 = arith.constant 5 : i32
    %66 = vector.broadcast %c5_i32 : i32 to vector<8x128xi32>
    %67 = arith.cmpi eq, %44, %66 : vector<8x128xi32>
    %68 = vector.broadcast %39 : f32 to vector<8x128xf32>
    %69 = arith.select %67, %68, %65 : vector<8x128xi1>, vector<8x128xf32>
    %c6_i32 = arith.constant 6 : i32
    %70 = vector.broadcast %c6_i32 : i32 to vector<8x128xi32>
    %71 = arith.cmpi eq, %44, %70 : vector<8x128xi32>
    %72 = vector.broadcast %40 : f32 to vector<8x128xf32>
    %73 = arith.select %71, %72, %69 : vector<8x128xi1>, vector<8x128xf32>
    %c7_i32 = arith.constant 7 : i32
    %74 = vector.broadcast %c7_i32 : i32 to vector<8x128xi32>
    %75 = arith.cmpi eq, %44, %74 : vector<8x128xi32>
    %76 = vector.broadcast %41 : f32 to vector<8x128xf32>
    %77 = arith.select %75, %76, %73 : vector<8x128xi1>, vector<8x128xf32>
    %78 = arith.mulf %15, %77 : vector<8x128xf32>
    %79 = arith.addf %42, %78 : vector<8x128xf32>
    %c1_i32_15 = arith.constant 1 : i32
    %80 = vector.broadcast %c1_i32_15 : i32 to vector<8x128xi32>
    %81 = arith.addi %6, %80 : vector<8x128xi32>
    %cst_16 = arith.constant 0.000000e+00 : f32
    %82 = vector.broadcast %cst_16 : f32 to vector<8x128xf32>
    %c0_i32_17 = arith.constant 0 : i32
    %83 = vector.broadcast %c0_i32_17 : i32 to vector<8x128xi32>
    %84 = arith.cmpi eq, %81, %83 : vector<8x128xi32>
    %85 = vector.broadcast %34 : f32 to vector<8x128xf32>
    %86 = arith.select %84, %85, %82 : vector<8x128xi1>, vector<8x128xf32>
    %c1_i32_18 = arith.constant 1 : i32
    %87 = vector.broadcast %c1_i32_18 : i32 to vector<8x128xi32>
    %88 = arith.cmpi eq, %81, %87 : vector<8x128xi32>
    %89 = vector.broadcast %35 : f32 to vector<8x128xf32>
    %90 = arith.select %88, %89, %86 : vector<8x128xi1>, vector<8x128xf32>
    %c2_i32_19 = arith.constant 2 : i32
    %91 = vector.broadcast %c2_i32_19 : i32 to vector<8x128xi32>
    %92 = arith.cmpi eq, %81, %91 : vector<8x128xi32>
    %93 = vector.broadcast %36 : f32 to vector<8x128xf32>
    %94 = arith.select %92, %93, %90 : vector<8x128xi1>, vector<8x128xf32>
    %c3_i32_20 = arith.constant 3 : i32
    %95 = vector.broadcast %c3_i32_20 : i32 to vector<8x128xi32>
    %96 = arith.cmpi eq, %81, %95 : vector<8x128xi32>
    %97 = vector.broadcast %37 : f32 to vector<8x128xf32>
    %98 = arith.select %96, %97, %94 : vector<8x128xi1>, vector<8x128xf32>
    %c4_i32_21 = arith.constant 4 : i32
    %99 = vector.broadcast %c4_i32_21 : i32 to vector<8x128xi32>
    %100 = arith.cmpi eq, %81, %99 : vector<8x128xi32>
    %101 = vector.broadcast %38 : f32 to vector<8x128xf32>
    %102 = arith.select %100, %101, %98 : vector<8x128xi1>, vector<8x128xf32>
    %c5_i32_22 = arith.constant 5 : i32
    %103 = vector.broadcast %c5_i32_22 : i32 to vector<8x128xi32>
    %104 = arith.cmpi eq, %81, %103 : vector<8x128xi32>
    %105 = vector.broadcast %39 : f32 to vector<8x128xf32>
    %106 = arith.select %104, %105, %102 : vector<8x128xi1>, vector<8x128xf32>
    %c6_i32_23 = arith.constant 6 : i32
    %107 = vector.broadcast %c6_i32_23 : i32 to vector<8x128xi32>
    %108 = arith.cmpi eq, %81, %107 : vector<8x128xi32>
    %109 = vector.broadcast %40 : f32 to vector<8x128xf32>
    %110 = arith.select %108, %109, %106 : vector<8x128xi1>, vector<8x128xf32>
    %c7_i32_24 = arith.constant 7 : i32
    %111 = vector.broadcast %c7_i32_24 : i32 to vector<8x128xi32>
    %112 = arith.cmpi eq, %81, %111 : vector<8x128xi32>
    %113 = vector.broadcast %41 : f32 to vector<8x128xf32>
    %114 = arith.select %112, %113, %110 : vector<8x128xi1>, vector<8x128xf32>
    %115 = arith.mulf %33, %114 : vector<8x128xf32>
    %116 = arith.addf %79, %115 : vector<8x128xf32>
    %c2_i32_25 = arith.constant 2 : i32
    %117 = vector.broadcast %c2_i32_25 : i32 to vector<8x128xi32>
    %118 = arith.addi %6, %117 : vector<8x128xi32>
    %cst_26 = arith.constant 0.000000e+00 : f32
    %119 = vector.broadcast %cst_26 : f32 to vector<8x128xf32>
    %c0_i32_27 = arith.constant 0 : i32
    %120 = vector.broadcast %c0_i32_27 : i32 to vector<8x128xi32>
    %121 = arith.cmpi eq, %118, %120 : vector<8x128xi32>
    %122 = vector.broadcast %34 : f32 to vector<8x128xf32>
    %123 = arith.select %121, %122, %119 : vector<8x128xi1>, vector<8x128xf32>
    %c1_i32_28 = arith.constant 1 : i32
    %124 = vector.broadcast %c1_i32_28 : i32 to vector<8x128xi32>
    %125 = arith.cmpi eq, %118, %124 : vector<8x128xi32>
    %126 = vector.broadcast %35 : f32 to vector<8x128xf32>
    %127 = arith.select %125, %126, %123 : vector<8x128xi1>, vector<8x128xf32>
    %c2_i32_29 = arith.constant 2 : i32
    %128 = vector.broadcast %c2_i32_29 : i32 to vector<8x128xi32>
    %129 = arith.cmpi eq, %118, %128 : vector<8x128xi32>
    %130 = vector.broadcast %36 : f32 to vector<8x128xf32>
    %131 = arith.select %129, %130, %127 : vector<8x128xi1>, vector<8x128xf32>
    %c3_i32_30 = arith.constant 3 : i32
    %132 = vector.broadcast %c3_i32_30 : i32 to vector<8x128xi32>
    %133 = arith.cmpi eq, %118, %132 : vector<8x128xi32>
    %134 = vector.broadcast %37 : f32 to vector<8x128xf32>
    %135 = arith.select %133, %134, %131 : vector<8x128xi1>, vector<8x128xf32>
    %c4_i32_31 = arith.constant 4 : i32
    %136 = vector.broadcast %c4_i32_31 : i32 to vector<8x128xi32>
    %137 = arith.cmpi eq, %118, %136 : vector<8x128xi32>
    %138 = vector.broadcast %38 : f32 to vector<8x128xf32>
    %139 = arith.select %137, %138, %135 : vector<8x128xi1>, vector<8x128xf32>
    %c5_i32_32 = arith.constant 5 : i32
    %140 = vector.broadcast %c5_i32_32 : i32 to vector<8x128xi32>
    %141 = arith.cmpi eq, %118, %140 : vector<8x128xi32>
    %142 = vector.broadcast %39 : f32 to vector<8x128xf32>
    %143 = arith.select %141, %142, %139 : vector<8x128xi1>, vector<8x128xf32>
    %c6_i32_33 = arith.constant 6 : i32
    %144 = vector.broadcast %c6_i32_33 : i32 to vector<8x128xi32>
    %145 = arith.cmpi eq, %118, %144 : vector<8x128xi32>
    %146 = vector.broadcast %40 : f32 to vector<8x128xf32>
    %147 = arith.select %145, %146, %143 : vector<8x128xi1>, vector<8x128xf32>
    %c7_i32_34 = arith.constant 7 : i32
    %148 = vector.broadcast %c7_i32_34 : i32 to vector<8x128xi32>
    %149 = arith.cmpi eq, %118, %148 : vector<8x128xi32>
    %150 = vector.broadcast %41 : f32 to vector<8x128xf32>
    %151 = arith.select %149, %150, %147 : vector<8x128xi1>, vector<8x128xf32>
    %152 = arith.mulf %27, %151 : vector<8x128xf32>
    %153 = arith.addf %116, %152 : vector<8x128xf32>
    %c3_i32_35 = arith.constant 3 : i32
    %154 = vector.broadcast %c3_i32_35 : i32 to vector<8x128xi32>
    %155 = arith.addi %6, %154 : vector<8x128xi32>
    %cst_36 = arith.constant 0.000000e+00 : f32
    %156 = vector.broadcast %cst_36 : f32 to vector<8x128xf32>
    %c0_i32_37 = arith.constant 0 : i32
    %157 = vector.broadcast %c0_i32_37 : i32 to vector<8x128xi32>
    %158 = arith.cmpi eq, %155, %157 : vector<8x128xi32>
    %159 = vector.broadcast %34 : f32 to vector<8x128xf32>
    %160 = arith.select %158, %159, %156 : vector<8x128xi1>, vector<8x128xf32>
    %c1_i32_38 = arith.constant 1 : i32
    %161 = vector.broadcast %c1_i32_38 : i32 to vector<8x128xi32>
    %162 = arith.cmpi eq, %155, %161 : vector<8x128xi32>
    %163 = vector.broadcast %35 : f32 to vector<8x128xf32>
    %164 = arith.select %162, %163, %160 : vector<8x128xi1>, vector<8x128xf32>
    %c2_i32_39 = arith.constant 2 : i32
    %165 = vector.broadcast %c2_i32_39 : i32 to vector<8x128xi32>
    %166 = arith.cmpi eq, %155, %165 : vector<8x128xi32>
    %167 = vector.broadcast %36 : f32 to vector<8x128xf32>
    %168 = arith.select %166, %167, %164 : vector<8x128xi1>, vector<8x128xf32>
    %c3_i32_40 = arith.constant 3 : i32
    %169 = vector.broadcast %c3_i32_40 : i32 to vector<8x128xi32>
    %170 = arith.cmpi eq, %155, %169 : vector<8x128xi32>
    %171 = vector.broadcast %37 : f32 to vector<8x128xf32>
    %172 = arith.select %170, %171, %168 : vector<8x128xi1>, vector<8x128xf32>
    %c4_i32_41 = arith.constant 4 : i32
    %173 = vector.broadcast %c4_i32_41 : i32 to vector<8x128xi32>
    %174 = arith.cmpi eq, %155, %173 : vector<8x128xi32>
    %175 = vector.broadcast %38 : f32 to vector<8x128xf32>
    %176 = arith.select %174, %175, %172 : vector<8x128xi1>, vector<8x128xf32>
    %c5_i32_42 = arith.constant 5 : i32
    %177 = vector.broadcast %c5_i32_42 : i32 to vector<8x128xi32>
    %178 = arith.cmpi eq, %155, %177 : vector<8x128xi32>
    %179 = vector.broadcast %39 : f32 to vector<8x128xf32>
    %180 = arith.select %178, %179, %176 : vector<8x128xi1>, vector<8x128xf32>
    %c6_i32_43 = arith.constant 6 : i32
    %181 = vector.broadcast %c6_i32_43 : i32 to vector<8x128xi32>
    %182 = arith.cmpi eq, %155, %181 : vector<8x128xi32>
    %183 = vector.broadcast %40 : f32 to vector<8x128xf32>
    %184 = arith.select %182, %183, %180 : vector<8x128xi1>, vector<8x128xf32>
    %c7_i32_44 = arith.constant 7 : i32
    %185 = vector.broadcast %c7_i32_44 : i32 to vector<8x128xi32>
    %186 = arith.cmpi eq, %155, %185 : vector<8x128xi32>
    %187 = vector.broadcast %41 : f32 to vector<8x128xf32>
    %188 = arith.select %186, %187, %184 : vector<8x128xi1>, vector<8x128xf32>
    %189 = arith.mulf %29, %188 : vector<8x128xf32>
    %190 = arith.addf %153, %189 : vector<8x128xf32>
    %c0_i32_45 = arith.constant 0 : i32
    %191 = vector.broadcast %c0_i32_45 : i32 to vector<8x128xi32>
    %192 = arith.cmpi slt, %6, %191 : vector<8x128xi32>
    %c5_i32_46 = arith.constant 5 : i32
    %193 = vector.broadcast %c5_i32_46 : i32 to vector<8x128xi32>
    %194 = arith.cmpi sge, %6, %193 : vector<8x128xi32>
    %195 = arith.ori %192, %194 : vector<8x128xi1>
    %cst_47 = arith.constant 0x7FC00000 : f32
    %196 = vector.broadcast %cst_47 : f32 to vector<8x128xf32>
    %197 = arith.select %195, %196, %190 : vector<8x128xi1>, vector<8x128xf32>
    %198 = arith.addf %0, %197 : vector<8x128xf32>
    %c0_48 = arith.constant 0 : index
    %c0_49 = arith.constant 0 : index
    %199 = vector.load %arg3[%c0_48, %c0_49] : memref<8x128xf32, #tpu.memory_space<vmem>>, vector<8x128xf32>
    tpu.vector_store %arg3[%c0_48, %c0_49], %198 {strides = array<i32>} : memref<8x128xf32, #tpu.memory_space<vmem>>, vector<8x128xf32>,
    return
  }
  func.func @transform_0(%arg0: i32) -> i32 {
    %c0_i32 = arith.constant 0 : i32
    %c0_i32_0 = arith.constant 0 : i32
    return %c0_i32 : i32
  }
  func.func @transform_1(%arg0: i32) -> (i32, i32) {
    %c0_i32 = arith.constant 0 : i32
    %c0_i32_0 = arith.constant 0 : i32
    return %arg0, %c0_i32 : i32, i32
  }
  func.func @transform_2(%arg0: i32) -> (i32, i32) {
    %c0_i32 = arith.constant 0 : i32
    %c0_i32_0 = arith.constant 0 : i32
    return %arg0, %c0_i32 : i32, i32
  }
}

</mosaic_0001>

<bundles_post_ra>
// kernel: tpu_custom_call.1
= control target key start
LH: loop header
LB: loop body
LE: loop exit
PB: predicated region body
PF: predicated region fallthrough
CT: control target
= control target key end

     0   :  { %7 = vsyncpa [#allocation3], 0  ;;  %s195_s0 = inlined_call_operand.hbm [shape: f32[1,128], index: 0, kind: input, shape index: {}]   ;;  %s196_s1 = inlined_call_operand.hbm [shape: s32[8,128], index: 1, kind: input, shape index: {}]   ;;  %s197_s2 = inlined_call_operand.hbm [shape: f32[8,128], index: 2, kind: output, shape index: {}]  }
   0x1   :  { %8 = vsyncpa [#allocation6], 0 }
   0x2   :  { %9 = vsyncpa [#allocation4], 0  ;;  %s141_s9 = smov [#allocation2]   ;;  %s142_s11 = smov [#allocation5]  }
   0x3   :  { %s16_s10 = sshll.u32 %s141_s9, 4  ;;  %s26_s12 = sshll.u32 %s142_s11, 4  ;;  %s17_s10 = int_to_ptr.vmem [resolvable:$true] %s16_s10  ;;  %s27_s12 = int_to_ptr.vmem [resolvable:$true] %s26_s12 }
   0x4   :  { %s69_s15 = scalar_lea.hbm %s195_s0, 16 }
   0x5   :  { %p70_p0 = scmp.ne.s32.totalorder %s195_s0, %s69_s15  ;;  %p73_p1 = scmp.lt.u32.totalorder %s69_s15, %s195_s0 }
   0x7   :  { %p75_p2 = pnand %p73_p1, %p70_p0 }
   0x9   :  { %78 = shalt.err (!%p75_p2)
}
   0xa   :  { %s79_s20 = scalar_lea.vmem %s17_s10, 16  ;;  %s83_s21 = scalar_lea.vmem %s17_s10, 32 }
   0xb   :  { %p80_p3 = scmp.ne.s32.totalorder %s17_s10, %s79_s20  ;;  %p84_p4 = scmp.lt.s32.totalorder %s17_s10, %s17_s10 }
   0xc   :  { %p85_p5 = scmp.lt.s32.totalorder %s83_s21, %s79_s20 }
   0xe   :  { %p86_p6 = por %p85_p5, %p84_p4 }
  0x10   :  { %p87_p7 = pnand %p86_p6, %p80_p3 }
  0x12   :  { %90 = shalt.err (!%p87_p7)
}
  0x13   :  { %19 = dma.hbm_to_vmem [thread:$0]  %s195_s0, 16, %s17_s10, [#allocation3]  }
  0x14   :  { %s91_s26 = scalar_lea.hbm %s196_s1, 128 }
  0x15   :  { %p92_p8 = scmp.ne.s32.totalorder %s196_s1, %s91_s26  ;;  %p95_p9 = scmp.lt.u32.totalorder %s91_s26, %s196_s1 }
  0x17   :  { %p97_p10 = pnand %p95_p9, %p92_p8 }
  0x19   :  { %100 = shalt.err (!%p97_p10)
}
  0x1a   :  { %s101_s3 = scalar_lea.vmem %s27_s12, 128  ;;  %p106_p12 = scmp.lt.s32.totalorder %s27_s12, %s27_s12 }
  0x1b   :  { %p102_p11 = scmp.ne.s32.totalorder %s27_s12, %s101_s3  ;;  %p107_p13 = scmp.lt.s32.totalorder %s101_s3, %s101_s3 }
  0x1d   :  { %p108_p0 = por %p107_p13, %p106_p12 }
  0x1f   :  { %p109_p1 = pnand %p108_p0, %p102_p11 }
  0x21   :  { %112 = shalt.err (!%p109_p1)
}
  0x22   :  { %29 = dma.hbm_to_vmem [thread:$0]  %s196_s1, 128, %s27_s12, [#allocation6]  }
  0x23   :  { %135 = dma.done.wait [#allocation3], 16  }
  0x24   :  { %136 = vsyncadd [#allocation3], 4294967280 }
  0x25   :  { %137 = dma.done.wait [#allocation6], 128  }
  0x26   :  { %138 = vsyncadd [#allocation6], 4294967168  ;;  %v43_v0 = vld [vmem:[#allocation5] sm:$0xff]  ;;  %v64_v1 = vld [vmem:[#allocation2] ss:$0 sm:$0xff]  ;;  %s143_s5 = smov [#allocation7]  }
  0x27   :  { %68 = vset.pattern.permute.xlu0 %v43_v0  ;;  %s54_s6 = sshll.u32 %s143_s5, 4  ;;  %s55_s6 = int_to_ptr.vmem [resolvable:$true] %s54_s6 }
  0x28   :  { %s113_s7 = scalar_lea.vmem %s55_s6, 128  ;;  %p118_p3 = scmp.lt.s32.totalorder %s55_s6, %s55_s6 }
  0x29   :  { %p114_p2 = scmp.ne.s32.totalorder %s55_s6, %s113_s7  ;;  %p119_p4 = scmp.lt.s32.totalorder %s113_s7, %s113_s7 }
  0x2b   :  { %45 = vperm.xlu0 %68, %v64_v1   ;;  %p120_p5 = por %p119_p4, %p118_p3 }
  0x2d   :  { %p121_p6 = pnand %p120_p5, %p114_p2 }
  0xaa   :  { %v46_v2 = vpop.permute.xlu0 %45 }
  0xab   :  { %47 = vst [vmem:[#allocation7] sm:$0xff] %v46_v2 }
  0xac   :  { %124 = shalt.err (!%p121_p6)
}
  0xad   :  { %s125_s9 = scalar_lea.hbm %s197_s2, 128 }
  0xae   :  { %p126_p7 = scmp.ne.s32.totalorder %s197_s2, %s125_s9  ;;  %p129_p8 = scmp.lt.u32.totalorder %s125_s9, %s197_s2 }
  0xb0   :  { %p131_p9 = pnand %p129_p8, %p126_p7 }
  0xb2   :  { %134 = shalt.err (!%p131_p9)
}
  0xb3   :  { %57 = dma.vmem_to_hbm [thread:$0]  %s55_s6, 128, %s197_s2, [#allocation4]  }
  0xb4   :  { %139 = dma.done.wait [#allocation4], 128  }
  0xb5   :  { %140 = vsyncadd [#allocation4], 4294967168 }
  0xb6   :  { %61 = vsyncpa [#allocation3], 1 }
  0xb7   :  { %62 = vsyncpa [#allocation6], 1 }
  0xb8   :  { %63 = vsyncpa [#allocation4], 1 }

// kernel: squeeze.1
= control target key start
LH: loop header
LB: loop body
LE: loop exit
PB: predicated region body
PF: predicated region fallthrough
CT: control target
= control target key end

     0   :  { %s67_s8 = smov 112   ;;  %s68_s11 = smov 80   ;;  %vm3_vm0 = vcmask 130048   ;;  %vm9_vm1 = vcmask 1048448   ;;  %vm15_vm2 = vcmask 917248   ;;  %vm21_vm3 = vcmask 786048   ;;  %s111_s0 = inlined_call_operand.vmem [shape: f32[2,16,16,1], index: 0, kind: input, shape index: {}]   ;;  %s112_s1 = inlined_call_operand.vmem [shape: f32[512], index: 1, kind: output, shape index: {}]  }
   0x1   :  { %v53_v0 = vld [vmem:[%s111_s0 + $0x7] ss:$8 sm:$0xf]   ;;  %v55_v1 = vld [vmem:[%s111_s0 + $0x5] ss:$8 sm:$0xf]  }
   0x2   :  { %7 = vrot.lane.b32.xlu0 %v53_v0, %s67_s8  ;;  %19 = vrot.lane.b32.xlu1 %v55_v1, %s68_s11  ;;  %v54_v2 = vld [vmem:[%s111_s0 + $0x6] ss:$8 sm:$0xf]   ;;  %v56_v3 = vld [vmem:[%s111_s0 + $0x4] ss:$8 sm:$0xf]  }
   0x3   :  { %s69_s16 = smov 96   ;;  %v2_v4 = vld [vmem:[%s111_s0] ss:$8 sm:$0xf]   ;;  %s70_s19 = smov 64   ;;  %vm27_vm4 = vcmask 654848  }
   0x4   :  { %v57_v5 = vld [vmem:[%s111_s0 + $0x3] ss:$8 sm:$0xf]   ;;  %4 = vst.msk [vmem:[#allocation0] sm:$0xf] %vm3_vm0, %v2_v4   ;;  %s71_s24 = smov 48  }
   0x5   :  { %v58_v6 = vld [vmem:[%s111_s0 + $0x2] ss:$8 sm:$0xf]   ;;  %s72_s25 = smov 32   ;;  %vm33_vm5 = vcmask 523648   ;;  %vm39_vm6 = vcmask 392448  }
   0x6   :  { %13 = vrot.lane.b32.xlu0 %v54_v2, %s69_s16  ;;  %25 = vrot.lane.b32.xlu1 %v56_v3, %s70_s19  ;;  %v59_v7 = vld [vmem:[%s111_s0 + $0x1] ss:$8 sm:$0xf]   ;;  %s73_s0 = smov 16   ;;  %vm45_vm7 = vcmask 261248  }
   0xa   :  { %31 = vrot.lane.b32.xlu0 %v57_v5, %s71_s24  ;;  %37 = vrot.lane.b32.xlu1 %v58_v6, %s72_s25 }
   0xe   :  { %43 = vrot.lane.b32.xlu0 %v59_v7, %s73_s0 }
  0x74   :  { %v8_v8 = vpop.permute.xlu0 %7   ;;  %v20_v9 = vpop.permute.xlu1 %19  }
  0x75   :  { %10 = vst.msk [vmem:[#allocation0] sm:$0xf] %vm9_vm1, %v8_v8  }
  0x78   :  { %v14_v10 = vpop.permute.xlu0 %13   ;;  %v26_v11 = vpop.permute.xlu1 %25  }
  0x79   :  { %16 = vst.msk [vmem:[#allocation0] sm:$0xf] %vm15_vm2, %v14_v10  }
  0x7a   :  { %22 = vst.msk [vmem:[#allocation0] sm:$0xf] %vm21_vm3, %v20_v9  }
  0x7b   :  { %28 = vst.msk [vmem:[#allocation0] sm:$0xf] %vm27_vm4, %v26_v11  }
  0x7c   :  { %v32_v12 = vpop.permute.xlu0 %31   ;;  %v38_v13 = vpop.permute.xlu1 %37  }
  0x7d   :  { %34 = vst.msk [vmem:[#allocation0] sm:$0xf] %vm33_vm5, %v32_v12  }
  0x7e   :  { %40 = vst.msk [vmem:[#allocation0] sm:$0xf] %vm39_vm6, %v38_v13  }
  0x80   :  { %v44_v14 = vpop.permute.xlu0 %43  }
  0x81   :  { %46 = vst.msk [vmem:[#allocation0] sm:$0xf] %vm45_vm7, %v44_v14  }
  0x88   :  { %v50_v15 = vld [vmem:[#allocation0] sm:$0xf] }
  0x89   :  { %52 = vst [vmem:[%s112_s1] sm:$0xf] %v50_v15 }

// kernel: _bspline_forward.1
= control target key start
LH: loop header
LB: loop body
LE: loop exit
PB: predicated region body
PF: predicated region fallthrough
CT: control target
= control target key end

     0   :  { %7 = vsyncpa [#allocation3], 0  ;;  %s281_s0 = inlined_call_operand.vmem [shape: f32[8], index: 0, kind: input, shape index: {}]   ;;  %s282_s1 = inlined_call_operand.vmem [shape: f32[8,128], index: 1, kind: input, shape index: {}]   ;;  %s283_s2 = inlined_call_operand.vmem [shape: f32[8,128], index: 2, kind: output, shape index: {}]  }
   0x1   :  { %s14_s11 = sshll.u32 %s281_s0, 4  ;;  %s15_s11 = int_to_ptr.vmem [resolvable:$true] %s14_s11 }
   0x2   :  { %s160_s12 = scalar_lea.vmem %s15_s11, 16  ;;  %p165_p1 = scmp.lt.s32.totalorder %s15_s11, %s15_s11 }
   0x3   :  { %p161_p0 = scmp.ne.s32.totalorder %s15_s11, %s160_s12  ;;  %p166_p2 = scmp.lt.s32.totalorder %s160_s12, %s160_s12 }
   0x5   :  { %p167_p3 = por %p166_p2, %p165_p1 }
   0x7   :  { %p168_p4 = pnand %p167_p3, %p161_p0 }
   0x9   :  { %171 = shalt.err (!%p168_p4)
}
   0xa   :  { %s174_s13 = smov [#allocation2]  }
   0xb   :  { %17 = dma.vmem_to_smem %s15_s11, 16, %s174_s13, [#allocation3]  }
   0xc   :  { %172 = dma.done.wait [#allocation3], 16  }
   0xd   :  { %173 = vsyncadd [#allocation3], 4294967280 }
   0xe   :  { %23 = sfence }
   0xf   :  { %v196_v0 = vld [vmem:[%s282_s1] sm:$0xff]  ;;  %s47_s16 = sld [smem:[#allocation2]]  ;;  %s150_s0 = sld [smem:[#allocation2 + $0x1]] }
  0x10   :  { %v149_v1 = vadd.f32 1.0, %v196_v0  ;;  %s151_s17 = sld [smem:[#allocation2 + $0x2]]  ;;  %s152_s18 = sld [smem:[#allocation2 + $0x3]] }
  0x11   :  { %s153_s19 = sld [smem:[#allocation2 + $0x4]]  ;;  %s154_s20 = sld [smem:[#allocation2 + $0x5]] }
  0x12   :  { %v26_v2 = vmul.f32 2.5, %v149_v1  ;;  %s155_s21 = sld [smem:[#allocation2 + $0x6]]  ;;  %s156_s22 = sld [smem:[#allocation2 + $0x7]] }
  0x14   :  { %v27_v3 = vfloor.f32 %v26_v2 }
  0x15   :  { %v199_v6 = vstv %s47_s16  ;;  %v201_v7 = vstv %s150_s0 }
  0x16   :  { %v157_v4 = vtrunc.f32 %v27_v3  ;;  %v29_v5 = vsub.f32 %v26_v2, %v27_v3  ;;  %v203_v8 = vstv %s151_s17  ;;  %v207_v12 = vstv %s152_s18 }
  0x17   :  { %v209_v14 = vstv %s153_s19  ;;  %v211_v15 = vstv %s154_s20 }
  0x18   :  { %v205_v9 = vcvt.f32.s32 %v157_v4  ;;  %v30_v10 = vmul.f32 %v29_v5, %v29_v5  ;;  %v32_v11 = vsub.f32 1.0, %v29_v5  ;;  %v39_v13 = vmul.f32 3.0, %v29_v5 }
  0x19   :  { %v213_v16 = vstv %s155_s21  ;;  %v221_v24 = vstv %s156_s22 }
  0x1a   :  { %v31_v17 = vmul.f32 %v30_v10, %v29_v5  ;;  %v33_v18 = vmul.f32 %v32_v11, %v32_v11  ;;  %v37_v19 = vmul.f32 3.0, %v30_v10  ;;  %vm55_vm0 = vcmp.eq.s32.totalorder %v205_v9, 0 }
  0x1b   :  { %v57_v20 = vsel %vm55_vm0, %v199_v6, 0.0  ;;  %vm58_vm1 = vcmp.eq.s32.totalorder %v205_v9, 1  ;;  %vm61_vm2 = vcmp.eq.s32.totalorder %v205_v9, 2  ;;  %vm64_vm3 = vcmp.eq.s32.totalorder %v205_v9, 3 }
  0x1c   :  { %v34_v21 = vmul.f32 %v33_v18, %v32_v11  ;;  %v36_v22 = vmul.f32 -3.0, %v31_v17  ;;  %v60_v23 = vsel %vm58_vm1, %v201_v7, %v57_v20  ;;  %v223_v25 = vmul.f32 0.16666667, %v31_v17 }
  0x1d   :  { %v63_v26 = vsel %vm61_vm2, %v203_v8, %v60_v23  ;;  %vm67_vm4 = vcmp.eq.s32.totalorder %v205_v9, 4  ;;  %vm70_vm5 = vcmp.eq.s32.totalorder %v205_v9, 5  ;;  %vm73_vm6 = vcmp.eq.s32.totalorder %v205_v9, 6 }
  0x1e   :  { %v35_v27 = vmul.f32 0.16666667, %v34_v21  ;;  %v38_v28 = vadd.f32 %v37_v19, %v36_v22  ;;  %v66_v29 = vsel %vm64_vm3, %v207_v12, %v63_v26  ;;  %vm76_vm7 = vcmp.eq.s32.totalorder %v205_v9, 7 }
  0x1f   :  { %v69_v30 = vsel %vm67_vm4, %v209_v14, %v66_v29  ;;  %v81_v31 = vadd.s32 1, %v205_v9  ;;  %v100_v32 = vadd.s32 2, %v205_v9  ;;  %v236_v36 = vadd.s32 3, %v205_v9 }
  0x20   :  { %v40_v33 = vadd.f32 %v39_v13, %v38_v28  ;;  %v44_v34 = vsub.f32 1.0, %v35_v27  ;;  %v72_v35 = vsel %vm70_vm5, %v211_v15, %v69_v30 }
  0x21   :  { %v75_v37 = vsel %vm73_vm6, %v213_v16, %v72_v35  ;;  %vm82_vm8 = vcmp.eq.s32.totalorder %v81_v31, 0  ;;  %vm84_vm9 = vcmp.eq.s32.totalorder %v81_v31, 1  ;;  %vm86_vm10 = vcmp.eq.s32.totalorder %v81_v31, 2 }
  0x22   :  { %v41_v38 = vadd.f32 1.0, %v40_v33  ;;  %v78_v39 = vsel %vm76_vm7, %v221_v24, %v75_v37  ;;  %v83_v40 = vsel %vm82_vm8, %v199_v6, 0.0  ;;  %vm88_vm11 = vcmp.eq.s32.totalorder %v81_v31, 3 }
  0x23   :  { %v79_v41 = vmul.f32 %v78_v39, %v35_v27  ;;  %v85_v42 = vsel %vm84_vm9, %v201_v7, %v83_v40  ;;  %vm90_vm12 = vcmp.eq.s32.totalorder %v81_v31, 4  ;;  %vm92_vm13 = vcmp.eq.s32.totalorder %v81_v31, 5 }
  0x24   :  { %v42_v43 = vmul.f32 0.16666667, %v41_v38  ;;  %v87_v44 = vsel %vm86_vm10, %v203_v8, %v85_v42  ;;  %vm94_vm14 = vcmp.eq.s32.totalorder %v81_v31, 6  ;;  %vm96_vm15 = vcmp.eq.s32.totalorder %v81_v31, 7 }
  0x25   :  { %v89_v45 = vsel %vm88_vm11, %v207_v12, %v87_v44  ;;  %vm101_vm0 = vcmp.eq.s32.totalorder %v100_v32, 0  ;;  %vm103_vm1 = vcmp.eq.s32.totalorder %v100_v32, 1  ;;  %vm105_vm2 = vcmp.eq.s32.totalorder %v100_v32, 2 }
  0x26   :  { %v45_v46 = vsub.f32 %v44_v34, %v42_v43  ;;  %v91_v47 = vsel %vm90_vm12, %v209_v14, %v89_v45  ;;  %v102_v48 = vsel %vm101_vm0, %v199_v6, 0.0  ;;  %vm107_vm3 = vcmp.eq.s32.totalorder %v100_v32, 3 }
  0x27   :  { %v93_v49 = vsel %vm92_vm13, %v211_v15, %v91_v47  ;;  %v104_v50 = vsel %vm103_vm1, %v201_v7, %v102_v48  ;;  %vm109_vm4 = vcmp.eq.s32.totalorder %v100_v32, 4  ;;  %vm111_vm5 = vcmp.eq.s32.totalorder %v100_v32, 5 }
  0x28   :  { %v46_v51 = vsub.f32 %v45_v46, %v223_v25  ;;  %v95_v52 = vsel %vm94_vm14, %v213_v16, %v93_v49  ;;  %v106_v53 = vsel %vm105_vm2, %v203_v8, %v104_v50  ;;  %vm113_vm6 = vcmp.eq.s32.totalorder %v100_v32, 6 }
  0x29   :  { %v97_v54 = vsel %vm96_vm15, %v221_v24, %v95_v52  ;;  %v108_v55 = vsel %vm107_vm3, %v207_v12, %v106_v53  ;;  %vm115_vm7 = vcmp.eq.s32.totalorder %v100_v32, 7  ;;  %vm120_vm8 = vcmp.eq.s32.totalorder %v236_v36, 0 }
  0x2a   :  { %v98_v56 = vmul.f32 %v97_v54, %v46_v51  ;;  %v110_v57 = vsel %vm109_vm4, %v209_v14, %v108_v55  ;;  %v121_v58 = vsel %vm120_vm8, %v199_v6, 0.0  ;;  %vm122_vm9 = vcmp.eq.s32.totalorder %v236_v36, 1 }
  0x2b   :  { %v112_v59 = vsel %vm111_vm5, %v211_v15, %v110_v57  ;;  %v123_v60 = vsel %vm122_vm9, %v201_v7, %v121_v58  ;;  %vm124_vm10 = vcmp.eq.s32.totalorder %v236_v36, 2  ;;  %vm126_vm11 = vcmp.eq.s32.totalorder %v236_v36, 3 }
  0x2c   :  { %v99_v61 = vadd.f32 %v98_v56, %v79_v41  ;;  %v114_v62 = vsel %vm113_vm6, %v213_v16, %v112_v59  ;;  %v125_v63 = vsel %vm124_vm10, %v203_v8, %v123_v60  ;;  %vm128_vm12 = vcmp.eq.s32.totalorder %v236_v36, 4 }
  0x2d   :  { %v116_v1 = vsel %vm115_vm7, %v221_v24, %v114_v62  ;;  %v127_v2 = vsel %vm126_vm11, %v207_v12, %v125_v63  ;;  %vm130_vm13 = vcmp.eq.s32.totalorder %v236_v36, 5  ;;  %vm132_vm14 = vcmp.eq.s32.totalorder %v236_v36, 6 }
  0x2e   :  { %v117_v3 = vmul.f32 %v116_v1, %v42_v43  ;;  %v129_v4 = vsel %vm128_vm12, %v209_v14, %v127_v2  ;;  %vm134_vm15 = vcmp.eq.s32.totalorder %v236_v36, 7  ;;  %vm138_vm0 = vcmp.lt.s32.totalorder %v205_v9, 0 }
  0x2f   :  { %v131_v5 = vsel %vm130_vm13, %v211_v15, %v129_v4  ;;  %vm139_vm1 = vcmp.ge.s32.totalorder %v205_v9, 5 }
  0x30   :  { %v118_v6 = vadd.f32 %v117_v3, %v99_v61  ;;  %v133_v7 = vsel %vm132_vm14, %v213_v16, %v131_v5  ;;  %vm140_vm2 = vmor %vm138_vm0, %vm139_vm1 }
  0x31   :  { %v135_v8 = vsel %vm134_vm15, %v221_v24, %v133_v7 }
  0x32   :  { %v136_v10 = vmul.f32 %v135_v8, %v223_v25 }
  0x34   :  { %v137_v11 = vadd.f32 %v136_v10, %v118_v6 }
  0x36   :  { %v141_v12 = vsel %vm140_vm2, nan, %v137_v11 }
  0x37   :  { %v142_v13 = vadd.f32 %v141_v12, %v196_v0 }
  0x39   :  { %143 = vst [vmem:[%s283_s2] sm:$0xff] %v142_v13 }
  0x3a   :  { %148 = vsyncpa [#allocation3], 1 }

</bundles_post_ra>
